<compile_context>
chip_gen: v7x
topology: tpu7x:2x2x1
jax: 0.10.0
libtpu: 0.0.40
codegen_flags: <defaults>
</compile_context>

<pallas_src>
import functools
import math

import jax
import jax.numpy as jnp
from jax.experimental import pallas as pl
from jax.experimental.pallas import tpu as pltpu

EMBED_DIM = 16     # hidden_dim == qkv_dim == ffnn_dim == embedding_dim == 16
NUM_BLOCKS = 2
MAX_LEN = 300


def _layer_norm_all(y, eps=1e-5):
    # F.layer_norm(y, y.shape): mean/var over ALL elements, no affine.
    # One-pass statistics: var = E[y^2] - mean^2 (single reduction sweep).
    count = float(y.size)
    s = jnp.sum(y)
    ss = jnp.sum(y * y)
    mean = s / count
    var = ss / count - mean * mean
    return (y - mean) * jax.lax.rsqrt(var + eps)


# ----------------------------------------------------------------------------
# Pallas kernel: positional encoding + 2 fused encoder blocks
# (embedding gather already done in the wrapper; x_ref is (B, S, E))
# ----------------------------------------------------------------------------
def encoder_kernel(x_ref, pe_ref,
                   wqkv_ref, bqkv_ref,
                   wff1_ref, bff1_ref,
                   wff2_ref, bff2_ref,
                   out_ref, *, num_blocks):
    B, S, E = x_ref.shape
    N = B * S
    inv_sqrt_d = 1.0 / math.sqrt(E)          # qkv_dim == E == 16

    # positional-encoding add, broadcast (S, E) over the batch dim
    x = x_ref[...] + pe_ref[...]

    # weights are tiny (<50 KiB total): load once, keep in vregs/VMEM values
    wqkv = wqkv_ref[...]        # (num_blocks, 3, E, E)
    bqkv = bqkv_ref[...]        # (num_blocks, 3, 1, E)
    wff1 = wff1_ref[...]        # (num_blocks, E, E)
    bff1 = bff1_ref[...]        # (num_blocks, 1, E)
    wff2 = wff2_ref[...]        # (num_blocks, E, E)
    bff2 = bff2_ref[...]        # (num_blocks, 1, E)

    for blk in range(num_blocks):
        # --- Q/K/V projections on the flattened (N, E) slab; three dots
        #     indexed on leading dims (no lane slicing of a fused result).
        xf = x.reshape(N, E)
        q = (jnp.dot(xf, wqkv[blk, 0], preferred_element_type=jnp.float32)
             + bqkv[blk, 0]).reshape(B, S, E)
        k = (jnp.dot(xf, wqkv[blk, 1], preferred_element_type=jnp.float32)
             + bqkv[blk, 1]).reshape(B, S, E)
        v = (jnp.dot(xf, wqkv[blk, 2], preferred_element_type=jnp.float32)
             + bqkv[blk, 2]).reshape(B, S, E)

        # --- batched attention (no per-batch Python loop, no concatenate)
        s = jnp.einsum('bqd,bkd->bqk', q, k,
                       preferred_element_type=jnp.float32) * inv_sqrt_d
        s = s - jnp.max(s, axis=-1, keepdims=True)       # stable softmax
        p = jnp.exp(s)
        p = p / jnp.sum(p, axis=-1, keepdims=True)
        attn = jnp.einsum('bqk,bkd->bqd', p, v,
                          preferred_element_type=jnp.float32)

        x = _layer_norm_all(x + attn)

        # --- position-wise FFN on the flattened slab
        xf = x.reshape(N, E)
        ff = jnp.maximum(
            jnp.dot(xf, wff1[blk], preferred_element_type=jnp.float32)
            + bff1[blk], 0.0)                            # ReLU
        ff = (jnp.dot(ff, wff2[blk], preferred_element_type=jnp.float32)
              + bff2[blk]).reshape(B, S, E)

        x = _layer_norm_all(x + ff)

    out_ref[...] = x.astype(out_ref.dtype)


# ----------------------------------------------------------------------------
# Parameters (deterministic, mirrors nn.Module __init__ shapes; weights stored
# (in, out) so the kernel computes x @ W + b; Q/K/V stacked on a leading dim)
# ----------------------------------------------------------------------------
def make_positional_encoding(max_len, d_model):
    position = jnp.arange(max_len, dtype=jnp.float32)[:, None]
    div_term = jnp.exp(jnp.arange(0, d_model, 2, dtype=jnp.float32)
                       * -(math.log(10000.0) / d_model))
    pe = jnp.zeros((max_len, d_model), jnp.float32)
    pe = pe.at[:, 0::2].set(jnp.sin(position * div_term))
    pe = pe.at[:, 1::2].set(jnp.cos(position * div_term))
    return pe


def init_params(key, vocab_size=1000, pad_idx=2,
                num_blocks=NUM_BLOCKS, max_len=MAX_LEN):
    E = EMBED_DIM
    keys = jax.random.split(key, 7)
    scale = 0.1

    embed = scale * jax.random.normal(keys[0], (vocab_size, E), jnp.float32)
    embed = embed.at[pad_idx].set(0.0)            # nn.Embedding padding_idx row

    wqkv = scale * jax.random.normal(keys[1], (num_blocks, 3, E, E), jnp.float32)
    bqkv = scale * jax.random.normal(keys[2], (num_blocks, 3, 1, E), jnp.float32)
    wff1 = scale * jax.random.normal(keys[3], (num_blocks, E, E), jnp.float32)
    bff1 = scale * jax.random.normal(keys[4], (num_blocks, 1, E), jnp.float32)
    wff2 = scale * jax.random.normal(keys[5], (num_blocks, E, E), jnp.float32)
    bff2 = scale * jax.random.normal(keys[6], (num_blocks, 1, E), jnp.float32)

    return dict(embed=embed, pe=make_positional_encoding(max_len, E),
                wqkv=wqkv, bqkv=bqkv,
                wff1=wff1, bff1=bff1,
                wff2=wff2, bff2=bff2)


# ----------------------------------------------------------------------------
# Forward wrapper (matches EncoderTransformer.forward semantics)
# ----------------------------------------------------------------------------
def encoder_transformer_forward(params, token_ids):
    B, S = token_ids.shape
    N = B * S
    embed = params["embed"]
    E = embed.shape[1]

    # Embedding lookup as a 1 KiB row gather in the wrapper (padding_idx row is
    # zero in the table, so semantics match nn.Embedding(padding_idx=...)).
    x = jnp.take(embed, token_ids.astype(jnp.int32), axis=0)   # (B, S, E)

    # Positional-encoding slab for the first S positions (no per-call tiling).
    pe = params["pe"][:S]                                        # (S, E)

    kernel = functools.partial(encoder_kernel, num_blocks=NUM_BLOCKS)
    vmem = pl.BlockSpec(memory_space=pltpu.MemorySpace.VMEM)

    # Advisory cost estimate so XLA schedules the custom call tightly.
    flops = NUM_BLOCKS * (2 * N * E * E * 5 + 4 * B * S * S * E)
    transcendentals = NUM_BLOCKS * (B * S * S + 2)
    bytes_accessed = 4 * (
        N * E + S * E
        + NUM_BLOCKS * (3 * E * E + 3 * E + 2 * E * E + 2 * E)
        + N * E)
    cost = pl.CostEstimate(flops=flops,
                           transcendentals=transcendentals,
                           bytes_accessed=bytes_accessed)

    out = pl.pallas_call(
        kernel,
        out_shape=jax.ShapeDtypeStruct((B, S, E), jnp.float32),
        in_specs=[vmem] * 8,
        out_specs=vmem,
        cost_estimate=cost,
    )(x, pe,
      params["wqkv"], params["bqkv"],
      params["wff1"], params["bff1"],
      params["wff2"], params["bff2"])

    return out


# ----------------------------------------------------------------------------
if __name__ == "__main__":
    key = jax.random.PRNGKey(0)
    vocab_size, pad_idx = 1000, 2
    B, S = 2, 8

    k_params, k_ids = jax.random.split(key)
    params = init_params(k_params, vocab_size, pad_idx)

    token_ids = jax.random.randint(k_ids, (B, S), 0, vocab_size, jnp.int32)
    token_ids = token_ids.at[0, S - 1].set(pad_idx)   # exercise padding_idx

    fwd = jax.jit(encoder_transformer_forward)
    out = fwd(params, token_ids)
    jax.block_until_ready(out)

    assert out.shape == (B, S, EMBED_DIM)
    assert bool(jnp.all(jnp.isfinite(out)))
    print("KERNEL_OK")
</pallas_src>

<mosaic_0001>
module attributes {stable_mosaic.version = 11 : i64} {
  func.func @encoder_kernel(%arg0: memref<2x8x16xf32, #tpu.memory_space<vmem>>, %arg1: memref<8x16xf32, #tpu.memory_space<vmem>>, %arg2: memref<2x3x16x16xf32, #tpu.memory_space<vmem>>, %arg3: memref<2x3x1x16xf32, #tpu.memory_space<vmem>>, %arg4: memref<2x16x16xf32, #tpu.memory_space<vmem>>, %arg5: memref<2x1x16xf32, #tpu.memory_space<vmem>>, %arg6: memref<2x16x16xf32, #tpu.memory_space<vmem>>, %arg7: memref<2x1x16xf32, #tpu.memory_space<vmem>>, %arg8: memref<2x8x16xf32, #tpu.memory_space<vmem>>) attributes {dimension_semantics = [], scalar_prefetch = 0 : i64, scratch_operands = 0 : i64, tpu.core_type = #tpu.core_type<tc>} {
    %c0 = arith.constant 0 : index
    %c0_0 = arith.constant 0 : index
    %c0_1 = arith.constant 0 : index
    %0 = vector.load %arg0[%c0, %c0_0, %c0_1] : memref<2x8x16xf32, #tpu.memory_space<vmem>>, vector<2x8x16xf32>
    %c0_2 = arith.constant 0 : index
    %c0_3 = arith.constant 0 : index
    %1 = vector.load %arg1[%c0_2, %c0_3] : memref<8x16xf32, #tpu.memory_space<vmem>>, vector<8x16xf32>
    %2 = vector.shape_cast %1 : vector<8x16xf32> to vector<1x8x16xf32>
    %3 = vector.broadcast %2 : vector<1x8x16xf32> to vector<2x8x16xf32>
    %4 = arith.addf %0, %3 : vector<2x8x16xf32>
    %c0_4 = arith.constant 0 : index
    %c0_5 = arith.constant 0 : index
    %c0_6 = arith.constant 0 : index
    %c0_7 = arith.constant 0 : index
    %5 = vector.load %arg2[%c0_4, %c0_5, %c0_6, %c0_7] : memref<2x3x16x16xf32, #tpu.memory_space<vmem>>, vector<2x3x16x16xf32>
    %c0_8 = arith.constant 0 : index
    %c0_9 = arith.constant 0 : index
    %c0_10 = arith.constant 0 : index
    %c0_11 = arith.constant 0 : index
    %6 = vector.load %arg3[%c0_8, %c0_9, %c0_10, %c0_11] : memref<2x3x1x16xf32, #tpu.memory_space<vmem>>, vector<2x3x1x16xf32>
    %c0_12 = arith.constant 0 : index
    %c0_13 = arith.constant 0 : index
    %c0_14 = arith.constant 0 : index
    %7 = vector.load %arg4[%c0_12, %c0_13, %c0_14] : memref<2x16x16xf32, #tpu.memory_space<vmem>>, vector<2x16x16xf32>
    %c0_15 = arith.constant 0 : index
    %c0_16 = arith.constant 0 : index
    %c0_17 = arith.constant 0 : index
    %8 = vector.load %arg5[%c0_15, %c0_16, %c0_17] : memref<2x1x16xf32, #tpu.memory_space<vmem>>, vector<2x1x16xf32>
    %c0_18 = arith.constant 0 : index
    %c0_19 = arith.constant 0 : index
    %c0_20 = arith.constant 0 : index
    %9 = vector.load %arg6[%c0_18, %c0_19, %c0_20] : memref<2x16x16xf32, #tpu.memory_space<vmem>>, vector<2x16x16xf32>
    %c0_21 = arith.constant 0 : index
    %c0_22 = arith.constant 0 : index
    %c0_23 = arith.constant 0 : index
    %10 = vector.load %arg7[%c0_21, %c0_22, %c0_23] : memref<2x1x16xf32, #tpu.memory_space<vmem>>, vector<2x1x16xf32>
    %11 = vector.shape_cast %4 : vector<2x8x16xf32> to vector<16x16xf32>
    %12 = vector.extract_strided_slice %5 {offsets = [0, 0, 0, 0], sizes = [1, 1, 16, 16], strides = [1, 1, 1, 1]} : vector<2x3x16x16xf32> to vector<1x1x16x16xf32>
    %13 = vector.shape_cast %12 : vector<1x1x16x16xf32> to vector<16x16xf32>
    %cst = arith.constant dense<0.000000e+00> : vector<16x16xf32>
    %14 = tpu.matmul %11, %13, %cst {dimension_numbers = #tpu.dot_dimension_numbers<[1], [0], [0], [1], [0, 0, 1, 1], [], []>} : vector<16x16xf32>, vector<16x16xf32>, vector<16x16xf32> -> vector<16x16xf32>
    %15 = vector.extract_strided_slice %6 {offsets = [0, 0, 0, 0], sizes = [1, 1, 1, 16], strides = [1, 1, 1, 1]} : vector<2x3x1x16xf32> to vector<1x1x1x16xf32>
    %16 = vector.shape_cast %15 : vector<1x1x1x16xf32> to vector<1x16xf32>
    %17 = vector.broadcast %16 : vector<1x16xf32> to vector<16x16xf32>
    %18 = arith.addf %14, %17 : vector<16x16xf32>
    %19 = vector.shape_cast %18 : vector<16x16xf32> to vector<2x8x16xf32>
    %20 = vector.extract_strided_slice %5 {offsets = [0, 1, 0, 0], sizes = [1, 1, 16, 16], strides = [1, 1, 1, 1]} : vector<2x3x16x16xf32> to vector<1x1x16x16xf32>
    %21 = vector.shape_cast %20 : vector<1x1x16x16xf32> to vector<16x16xf32>
    %cst_24 = arith.constant dense<0.000000e+00> : vector<16x16xf32>
    %22 = tpu.matmul %11, %21, %cst_24 {dimension_numbers = #tpu.dot_dimension_numbers<[1], [0], [0], [1], [0, 0, 1, 1], [], []>} : vector<16x16xf32>, vector<16x16xf32>, vector<16x16xf32> -> vector<16x16xf32>
    %23 = vector.extract_strided_slice %6 {offsets = [0, 1, 0, 0], sizes = [1, 1, 1, 16], strides = [1, 1, 1, 1]} : vector<2x3x1x16xf32> to vector<1x1x1x16xf32>
    %24 = vector.shape_cast %23 : vector<1x1x1x16xf32> to vector<1x16xf32>
    %25 = vector.broadcast %24 : vector<1x16xf32> to vector<16x16xf32>
    %26 = arith.addf %22, %25 : vector<16x16xf32>
    %27 = vector.shape_cast %26 : vector<16x16xf32> to vector<2x8x16xf32>
    %28 = vector.extract_strided_slice %5 {offsets = [0, 2, 0, 0], sizes = [1, 1, 16, 16], strides = [1, 1, 1, 1]} : vector<2x3x16x16xf32> to vector<1x1x16x16xf32>
    %29 = vector.shape_cast %28 : vector<1x1x16x16xf32> to vector<16x16xf32>
    %cst_25 = arith.constant dense<0.000000e+00> : vector<16x16xf32>
    %30 = tpu.matmul %11, %29, %cst_25 {dimension_numbers = #tpu.dot_dimension_numbers<[1], [0], [0], [1], [0, 0, 1, 1], [], []>} : vector<16x16xf32>, vector<16x16xf32>, vector<16x16xf32> -> vector<16x16xf32>
    %31 = vector.extract_strided_slice %6 {offsets = [0, 2, 0, 0], sizes = [1, 1, 1, 16], strides = [1, 1, 1, 1]} : vector<2x3x1x16xf32> to vector<1x1x1x16xf32>
    %32 = vector.shape_cast %31 : vector<1x1x1x16xf32> to vector<1x16xf32>
    %33 = vector.broadcast %32 : vector<1x16xf32> to vector<16x16xf32>
    %34 = arith.addf %30, %33 : vector<16x16xf32>
    %35 = vector.shape_cast %34 : vector<16x16xf32> to vector<2x8x16xf32>
    "tpu.trace_start"() <{level = 10 : i32, message = "bqd,bkd->bqk"}> : () -> ()
    %cst_26 = arith.constant dense<0.000000e+00> : vector<2x8x8xf32>
    %36 = tpu.matmul %19, %27, %cst_26 {dimension_numbers = #tpu.dot_dimension_numbers<[2], [2], [1], [1], [0, 0, 0, 1, 1, 1], [0], [0]>} : vector<2x8x16xf32>, vector<2x8x16xf32>, vector<2x8x8xf32> -> vector<2x8x8xf32>
    "tpu.trace_stop"() : () -> ()
    %cst_27 = arith.constant 2.500000e-01 : f32
    %37 = vector.broadcast %cst_27 : f32 to vector<2x8x8xf32>
    %38 = arith.mulf %36, %37 : vector<2x8x8xf32>
    %cst_28 = arith.constant dense<0xFF800000> : vector<2x8xf32>
    %39 = vector.multi_reduction <maximumf>, %38, %cst_28 [2] : vector<2x8x8xf32> to vector<2x8xf32>
    %40 = vector.shape_cast %39 : vector<2x8xf32> to vector<2x8x1xf32>
    %41 = vector.broadcast %40 : vector<2x8x1xf32> to vector<2x8x8xf32>
    %42 = arith.subf %38, %41 : vector<2x8x8xf32>
    %43 = math.exp %42 : vector<2x8x8xf32>
    %cst_29 = arith.constant dense<0.000000e+00> : vector<2x8xf32>
    %44 = vector.multi_reduction <add>, %43, %cst_29 [2] : vector<2x8x8xf32> to vector<2x8xf32>
    %45 = vector.shape_cast %44 : vector<2x8xf32> to vector<2x8x1xf32>
    %46 = vector.broadcast %45 : vector<2x8x1xf32> to vector<2x8x8xf32>
    %47 = arith.divf %43, %46 : vector<2x8x8xf32>
    "tpu.trace_start"() <{level = 10 : i32, message = "bqk,bkd->bqd"}> : () -> ()
    %cst_30 = arith.constant dense<0.000000e+00> : vector<2x8x16xf32>
    %48 = tpu.matmul %47, %35, %cst_30 {dimension_numbers = #tpu.dot_dimension_numbers<[2], [1], [1], [2], [0, 0, 0, 1, 1, 2], [0], [0]>} : vector<2x8x8xf32>, vector<2x8x16xf32>, vector<2x8x16xf32> -> vector<2x8x16xf32>
    "tpu.trace_stop"() : () -> ()
    %49 = arith.addf %4, %48 : vector<2x8x16xf32>
    %50 = vector.shape_cast %49 : vector<2x8x16xf32> to vector<1x2x8x16xf32>
    %cst_31 = arith.constant dense<0.000000e+00> : vector<1xf32>
    %51 = vector.multi_reduction <add>, %50, %cst_31 [1, 2, 3] : vector<1x2x8x16xf32> to vector<1xf32>
    %52 = vector.shape_cast %51 : vector<1xf32> to vector<1x1x1x1xf32>
    %53 = vector.extract %52[0, 0, 0, 0] : f32 from vector<1x1x1x1xf32>
    %54 = arith.mulf %49, %49 : vector<2x8x16xf32>
    %55 = vector.shape_cast %54 : vector<2x8x16xf32> to vector<1x2x8x16xf32>
    %cst_32 = arith.constant dense<0.000000e+00> : vector<1xf32>
    %56 = vector.multi_reduction <add>, %55, %cst_32 [1, 2, 3] : vector<1x2x8x16xf32> to vector<1xf32>
    %57 = vector.shape_cast %56 : vector<1xf32> to vector<1x1x1x1xf32>
    %58 = vector.extract %57[0, 0, 0, 0] : f32 from vector<1x1x1x1xf32>
    %cst_33 = arith.constant 2.560000e+02 : f32
    %59 = arith.divf %53, %cst_33 : f32
    %cst_34 = arith.constant 2.560000e+02 : f32
    %60 = arith.divf %58, %cst_34 : f32
    %61 = arith.mulf %59, %59 : f32
    %62 = arith.subf %60, %61 : f32
    %63 = vector.broadcast %59 : f32 to vector<2x8x16xf32>
    %64 = arith.subf %49, %63 : vector<2x8x16xf32>
    %cst_35 = arith.constant 9.99999974E-6 : f32
    %65 = arith.addf %62, %cst_35 : f32
    %66 = math.rsqrt %65 : f32
    %67 = vector.broadcast %66 : f32 to vector<2x8x16xf32>
    %68 = arith.mulf %64, %67 : vector<2x8x16xf32>
    %69 = vector.shape_cast %68 : vector<2x8x16xf32> to vector<16x16xf32>
    %70 = vector.extract_strided_slice %7 {offsets = [0, 0, 0], sizes = [1, 16, 16], strides = [1, 1, 1]} : vector<2x16x16xf32> to vector<1x16x16xf32>
    %71 = vector.shape_cast %70 : vector<1x16x16xf32> to vector<16x16xf32>
    %cst_36 = arith.constant dense<0.000000e+00> : vector<16x16xf32>
    %72 = tpu.matmul %69, %71, %cst_36 {dimension_numbers = #tpu.dot_dimension_numbers<[1], [0], [0], [1], [0, 0, 1, 1], [], []>} : vector<16x16xf32>, vector<16x16xf32>, vector<16x16xf32> -> vector<16x16xf32>
    %73 = vector.extract_strided_slice %8 {offsets = [0, 0, 0], sizes = [1, 1, 16], strides = [1, 1, 1]} : vector<2x1x16xf32> to vector<1x1x16xf32>
    %74 = vector.shape_cast %73 : vector<1x1x16xf32> to vector<1x16xf32>
    %75 = vector.broadcast %74 : vector<1x16xf32> to vector<16x16xf32>
    %76 = arith.addf %72, %75 : vector<16x16xf32>
    %cst_37 = arith.constant 0.000000e+00 : f32
    %77 = vector.broadcast %cst_37 : f32 to vector<16x16xf32>
    %78 = arith.maximumf %76, %77 : vector<16x16xf32>
    %79 = vector.extract_strided_slice %9 {offsets = [0, 0, 0], sizes = [1, 16, 16], strides = [1, 1, 1]} : vector<2x16x16xf32> to vector<1x16x16xf32>
    %80 = vector.shape_cast %79 : vector<1x16x16xf32> to vector<16x16xf32>
    %cst_38 = arith.constant dense<0.000000e+00> : vector<16x16xf32>
    %81 = tpu.matmul %78, %80, %cst_38 {dimension_numbers = #tpu.dot_dimension_numbers<[1], [0], [0], [1], [0, 0, 1, 1], [], []>} : vector<16x16xf32>, vector<16x16xf32>, vector<16x16xf32> -> vector<16x16xf32>
    %82 = vector.extract_strided_slice %10 {offsets = [0, 0, 0], sizes = [1, 1, 16], strides = [1, 1, 1]} : vector<2x1x16xf32> to vector<1x1x16xf32>
    %83 = vector.shape_cast %82 : vector<1x1x16xf32> to vector<1x16xf32>
    %84 = vector.broadcast %83 : vector<1x16xf32> to vector<16x16xf32>
    %85 = arith.addf %81, %84 : vector<16x16xf32>
    %86 = vector.shape_cast %85 : vector<16x16xf32> to vector<2x8x16xf32>
    %87 = arith.addf %68, %86 : vector<2x8x16xf32>
    %88 = vector.shape_cast %87 : vector<2x8x16xf32> to vector<1x2x8x16xf32>
    %cst_39 = arith.constant dense<0.000000e+00> : vector<1xf32>
    %89 = vector.multi_reduction <add>, %88, %cst_39 [1, 2, 3] : vector<1x2x8x16xf32> to vector<1xf32>
    %90 = vector.shape_cast %89 : vector<1xf32> to vector<1x1x1x1xf32>
    %91 = vector.extract %90[0, 0, 0, 0] : f32 from vector<1x1x1x1xf32>
    %92 = arith.mulf %87, %87 : vector<2x8x16xf32>
    %93 = vector.shape_cast %92 : vector<2x8x16xf32> to vector<1x2x8x16xf32>
    %cst_40 = arith.constant dense<0.000000e+00> : vector<1xf32>
    %94 = vector.multi_reduction <add>, %93, %cst_40 [1, 2, 3] : vector<1x2x8x16xf32> to vector<1xf32>
    %95 = vector.shape_cast %94 : vector<1xf32> to vector<1x1x1x1xf32>
    %96 = vector.extract %95[0, 0, 0, 0] : f32 from vector<1x1x1x1xf32>
    %cst_41 = arith.constant 2.560000e+02 : f32
    %97 = arith.divf %91, %cst_41 : f32
    %cst_42 = arith.constant 2.560000e+02 : f32
    %98 = arith.divf %96, %cst_42 : f32
    %99 = arith.mulf %97, %97 : f32
    %100 = arith.subf %98, %99 : f32
    %101 = vector.broadcast %97 : f32 to vector<2x8x16xf32>
    %102 = arith.subf %87, %101 : vector<2x8x16xf32>
    %cst_43 = arith.constant 9.99999974E-6 : f32
    %103 = arith.addf %100, %cst_43 : f32
    %104 = math.rsqrt %103 : f32
    %105 = vector.broadcast %104 : f32 to vector<2x8x16xf32>
    %106 = arith.mulf %102, %105 : vector<2x8x16xf32>
    %107 = vector.shape_cast %106 : vector<2x8x16xf32> to vector<16x16xf32>
    %108 = vector.extract_strided_slice %5 {offsets = [1, 0, 0, 0], sizes = [1, 1, 16, 16], strides = [1, 1, 1, 1]} : vector<2x3x16x16xf32> to vector<1x1x16x16xf32>
    %109 = vector.shape_cast %108 : vector<1x1x16x16xf32> to vector<16x16xf32>
    %cst_44 = arith.constant dense<0.000000e+00> : vector<16x16xf32>
    %110 = tpu.matmul %107, %109, %cst_44 {dimension_numbers = #tpu.dot_dimension_numbers<[1], [0], [0], [1], [0, 0, 1, 1], [], []>} : vector<16x16xf32>, vector<16x16xf32>, vector<16x16xf32> -> vector<16x16xf32>
    %111 = vector.extract_strided_slice %6 {offsets = [1, 0, 0, 0], sizes = [1, 1, 1, 16], strides = [1, 1, 1, 1]} : vector<2x3x1x16xf32> to vector<1x1x1x16xf32>
    %112 = vector.shape_cast %111 : vector<1x1x1x16xf32> to vector<1x16xf32>
    %113 = vector.broadcast %112 : vector<1x16xf32> to vector<16x16xf32>
    %114 = arith.addf %110, %113 : vector<16x16xf32>
    %115 = vector.shape_cast %114 : vector<16x16xf32> to vector<2x8x16xf32>
    %116 = vector.extract_strided_slice %5 {offsets = [1, 1, 0, 0], sizes = [1, 1, 16, 16], strides = [1, 1, 1, 1]} : vector<2x3x16x16xf32> to vector<1x1x16x16xf32>
    %117 = vector.shape_cast %116 : vector<1x1x16x16xf32> to vector<16x16xf32>
    %cst_45 = arith.constant dense<0.000000e+00> : vector<16x16xf32>
    %118 = tpu.matmul %107, %117, %cst_45 {dimension_numbers = #tpu.dot_dimension_numbers<[1], [0], [0], [1], [0, 0, 1, 1], [], []>} : vector<16x16xf32>, vector<16x16xf32>, vector<16x16xf32> -> vector<16x16xf32>
    %119 = vector.extract_strided_slice %6 {offsets = [1, 1, 0, 0], sizes = [1, 1, 1, 16], strides = [1, 1, 1, 1]} : vector<2x3x1x16xf32> to vector<1x1x1x16xf32>
    %120 = vector.shape_cast %119 : vector<1x1x1x16xf32> to vector<1x16xf32>
    %121 = vector.broadcast %120 : vector<1x16xf32> to vector<16x16xf32>
    %122 = arith.addf %118, %121 : vector<16x16xf32>
    %123 = vector.shape_cast %122 : vector<16x16xf32> to vector<2x8x16xf32>
    %124 = vector.extract_strided_slice %5 {offsets = [1, 2, 0, 0], sizes = [1, 1, 16, 16], strides = [1, 1, 1, 1]} : vector<2x3x16x16xf32> to vector<1x1x16x16xf32>
    %125 = vector.shape_cast %124 : vector<1x1x16x16xf32> to vector<16x16xf32>
    %cst_46 = arith.constant dense<0.000000e+00> : vector<16x16xf32>
    %126 = tpu.matmul %107, %125, %cst_46 {dimension_numbers = #tpu.dot_dimension_numbers<[1], [0], [0], [1], [0, 0, 1, 1], [], []>} : vector<16x16xf32>, vector<16x16xf32>, vector<16x16xf32> -> vector<16x16xf32>
    %127 = vector.extract_strided_slice %6 {offsets = [1, 2, 0, 0], sizes = [1, 1, 1, 16], strides = [1, 1, 1, 1]} : vector<2x3x1x16xf32> to vector<1x1x1x16xf32>
    %128 = vector.shape_cast %127 : vector<1x1x1x16xf32> to vector<1x16xf32>
    %129 = vector.broadcast %128 : vector<1x16xf32> to vector<16x16xf32>
    %130 = arith.addf %126, %129 : vector<16x16xf32>
    %131 = vector.shape_cast %130 : vector<16x16xf32> to vector<2x8x16xf32>
    "tpu.trace_start"() <{level = 10 : i32, message = "bqd,bkd->bqk"}> : () -> ()
    %cst_47 = arith.constant dense<0.000000e+00> : vector<2x8x8xf32>
    %132 = tpu.matmul %115, %123, %cst_47 {dimension_numbers = #tpu.dot_dimension_numbers<[2], [2], [1], [1], [0, 0, 0, 1, 1, 1], [0], [0]>} : vector<2x8x16xf32>, vector<2x8x16xf32>, vector<2x8x8xf32> -> vector<2x8x8xf32>
    "tpu.trace_stop"() : () -> ()
    %cst_48 = arith.constant 2.500000e-01 : f32
    %133 = vector.broadcast %cst_48 : f32 to vector<2x8x8xf32>
    %134 = arith.mulf %132, %133 : vector<2x8x8xf32>
    %cst_49 = arith.constant dense<0xFF800000> : vector<2x8xf32>
    %135 = vector.multi_reduction <maximumf>, %134, %cst_49 [2] : vector<2x8x8xf32> to vector<2x8xf32>
    %136 = vector.shape_cast %135 : vector<2x8xf32> to vector<2x8x1xf32>
    %137 = vector.broadcast %136 : vector<2x8x1xf32> to vector<2x8x8xf32>
    %138 = arith.subf %134, %137 : vector<2x8x8xf32>
    %139 = math.exp %138 : vector<2x8x8xf32>
    %cst_50 = arith.constant dense<0.000000e+00> : vector<2x8xf32>
    %140 = vector.multi_reduction <add>, %139, %cst_50 [2] : vector<2x8x8xf32> to vector<2x8xf32>
    %141 = vector.shape_cast %140 : vector<2x8xf32> to vector<2x8x1xf32>
    %142 = vector.broadcast %141 : vector<2x8x1xf32> to vector<2x8x8xf32>
    %143 = arith.divf %139, %142 : vector<2x8x8xf32>
    "tpu.trace_start"() <{level = 10 : i32, message = "bqk,bkd->bqd"}> : () -> ()
    %cst_51 = arith.constant dense<0.000000e+00> : vector<2x8x16xf32>
    %144 = tpu.matmul %143, %131, %cst_51 {dimension_numbers = #tpu.dot_dimension_numbers<[2], [1], [1], [2], [0, 0, 0, 1, 1, 2], [0], [0]>} : vector<2x8x8xf32>, vector<2x8x16xf32>, vector<2x8x16xf32> -> vector<2x8x16xf32>
    "tpu.trace_stop"() : () -> ()
    %145 = arith.addf %106, %144 : vector<2x8x16xf32>
    %146 = vector.shape_cast %145 : vector<2x8x16xf32> to vector<1x2x8x16xf32>
    %cst_52 = arith.constant dense<0.000000e+00> : vector<1xf32>
    %147 = vector.multi_reduction <add>, %146, %cst_52 [1, 2, 3] : vector<1x2x8x16xf32> to vector<1xf32>
    %148 = vector.shape_cast %147 : vector<1xf32> to vector<1x1x1x1xf32>
    %149 = vector.extract %148[0, 0, 0, 0] : f32 from vector<1x1x1x1xf32>
    %150 = arith.mulf %145, %145 : vector<2x8x16xf32>
    %151 = vector.shape_cast %150 : vector<2x8x16xf32> to vector<1x2x8x16xf32>
    %cst_53 = arith.constant dense<0.000000e+00> : vector<1xf32>
    %152 = vector.multi_reduction <add>, %151, %cst_53 [1, 2, 3] : vector<1x2x8x16xf32> to vector<1xf32>
    %153 = vector.shape_cast %152 : vector<1xf32> to vector<1x1x1x1xf32>
    %154 = vector.extract %153[0, 0, 0, 0] : f32 from vector<1x1x1x1xf32>
    %cst_54 = arith.constant 2.560000e+02 : f32
    %155 = arith.divf %149, %cst_54 : f32
    %cst_55 = arith.constant 2.560000e+02 : f32
    %156 = arith.divf %154, %cst_55 : f32
    %157 = arith.mulf %155, %155 : f32
    %158 = arith.subf %156, %157 : f32
    %159 = vector.broadcast %155 : f32 to vector<2x8x16xf32>
    %160 = arith.subf %145, %159 : vector<2x8x16xf32>
    %cst_56 = arith.constant 9.99999974E-6 : f32
    %161 = arith.addf %158, %cst_56 : f32
    %162 = math.rsqrt %161 : f32
    %163 = vector.broadcast %162 : f32 to vector<2x8x16xf32>
    %164 = arith.mulf %160, %163 : vector<2x8x16xf32>
    %165 = vector.shape_cast %164 : vector<2x8x16xf32> to vector<16x16xf32>
    %166 = vector.extract_strided_slice %7 {offsets = [1, 0, 0], sizes = [1, 16, 16], strides = [1, 1, 1]} : vector<2x16x16xf32> to vector<1x16x16xf32>
    %167 = vector.shape_cast %166 : vector<1x16x16xf32> to vector<16x16xf32>
    %cst_57 = arith.constant dense<0.000000e+00> : vector<16x16xf32>
    %168 = tpu.matmul %165, %167, %cst_57 {dimension_numbers = #tpu.dot_dimension_numbers<[1], [0], [0], [1], [0, 0, 1, 1], [], []>} : vector<16x16xf32>, vector<16x16xf32>, vector<16x16xf32> -> vector<16x16xf32>
    %169 = vector.extract_strided_slice %8 {offsets = [1, 0, 0], sizes = [1, 1, 16], strides = [1, 1, 1]} : vector<2x1x16xf32> to vector<1x1x16xf32>
    %170 = vector.shape_cast %169 : vector<1x1x16xf32> to vector<1x16xf32>
    %171 = vector.broadcast %170 : vector<1x16xf32> to vector<16x16xf32>
    %172 = arith.addf %168, %171 : vector<16x16xf32>
    %cst_58 = arith.constant 0.000000e+00 : f32
    %173 = vector.broadcast %cst_58 : f32 to vector<16x16xf32>
    %174 = arith.maximumf %172, %173 : vector<16x16xf32>
    %175 = vector.extract_strided_slice %9 {offsets = [1, 0, 0], sizes = [1, 16, 16], strides = [1, 1, 1]} : vector<2x16x16xf32> to vector<1x16x16xf32>
    %176 = vector.shape_cast %175 : vector<1x16x16xf32> to vector<16x16xf32>
    %cst_59 = arith.constant dense<0.000000e+00> : vector<16x16xf32>
    %177 = tpu.matmul %174, %176, %cst_59 {dimension_numbers = #tpu.dot_dimension_numbers<[1], [0], [0], [1], [0, 0, 1, 1], [], []>} : vector<16x16xf32>, vector<16x16xf32>, vector<16x16xf32> -> vector<16x16xf32>
    %178 = vector.extract_strided_slice %10 {offsets = [1, 0, 0], sizes = [1, 1, 16], strides = [1, 1, 1]} : vector<2x1x16xf32> to vector<1x1x16xf32>
    %179 = vector.shape_cast %178 : vector<1x1x16xf32> to vector<1x16xf32>
    %180 = vector.broadcast %179 : vector<1x16xf32> to vector<16x16xf32>
    %181 = arith.addf %177, %180 : vector<16x16xf32>
    %182 = vector.shape_cast %181 : vector<16x16xf32> to vector<2x8x16xf32>
    %183 = arith.addf %164, %182 : vector<2x8x16xf32>
    %184 = vector.shape_cast %183 : vector<2x8x16xf32> to vector<1x2x8x16xf32>
    %cst_60 = arith.constant dense<0.000000e+00> : vector<1xf32>
    %185 = vector.multi_reduction <add>, %184, %cst_60 [1, 2, 3] : vector<1x2x8x16xf32> to vector<1xf32>
    %186 = vector.shape_cast %185 : vector<1xf32> to vector<1x1x1x1xf32>
    %187 = vector.extract %186[0, 0, 0, 0] : f32 from vector<1x1x1x1xf32>
    %188 = arith.mulf %183, %183 : vector<2x8x16xf32>
    %189 = vector.shape_cast %188 : vector<2x8x16xf32> to vector<1x2x8x16xf32>
    %cst_61 = arith.constant dense<0.000000e+00> : vector<1xf32>
    %190 = vector.multi_reduction <add>, %189, %cst_61 [1, 2, 3] : vector<1x2x8x16xf32> to vector<1xf32>
    %191 = vector.shape_cast %190 : vector<1xf32> to vector<1x1x1x1xf32>
    %192 = vector.extract %191[0, 0, 0, 0] : f32 from vector<1x1x1x1xf32>
    %cst_62 = arith.constant 2.560000e+02 : f32
    %193 = arith.divf %187, %cst_62 : f32
    %cst_63 = arith.constant 2.560000e+02 : f32
    %194 = arith.divf %192, %cst_63 : f32
    %195 = arith.mulf %193, %193 : f32
    %196 = arith.subf %194, %195 : f32
    %197 = vector.broadcast %193 : f32 to vector<2x8x16xf32>
    %198 = arith.subf %183, %197 : vector<2x8x16xf32>
    %cst_64 = arith.constant 9.99999974E-6 : f32
    %199 = arith.addf %196, %cst_64 : f32
    %200 = math.rsqrt %199 : f32
    %201 = vector.broadcast %200 : f32 to vector<2x8x16xf32>
    %202 = arith.mulf %198, %201 : vector<2x8x16xf32>
    %c0_65 = arith.constant 0 : index
    %c0_66 = arith.constant 0 : index
    %c0_67 = arith.constant 0 : index
    %203 = vector.load %arg8[%c0_65, %c0_66, %c0_67] : memref<2x8x16xf32, #tpu.memory_space<vmem>>, vector<2x8x16xf32>
    tpu.vector_store %arg8[%c0_65, %c0_66, %c0_67], %202 {strides = array<i32>} : memref<2x8x16xf32, #tpu.memory_space<vmem>>, vector<2x8x16xf32>,
    return
  }
}

</mosaic_0001>

<bundles_post_ra>
// kernel: encoder_transformer_forward.1
= control target key start
LH: loop header
LB: loop body
LE: loop exit
PB: predicated region body
PF: predicated region fallthrough
CT: control target
= control target key end

     0   :  { %vm71_vm0 = vcmask 130048   ;;  %s2355_s0 = inlined_call_operand.vmem [shape: f32[2,8,16], index: 0, kind: input, shape index: {}]   ;;  %s2356_s1 = inlined_call_operand.vmem [shape: f32[8,16], index: 1, kind: input, shape index: {}]   ;;  %s2357_s2 = inlined_call_operand.vmem [shape: f32[2,3,16,16], index: 2, kind: input, shape index: {}]   ;;  %s2358_s3 = inlined_call_operand.vmem [shape: f32[2,3,1,16], index: 3, kind: input, shape index: {}]   ;;  %s2359_s4 = inlined_call_operand.vmem [shape: f32[2,16,16], index: 4, kind: input, shape index: {}]   ;;  %s2360_s5 = inlined_call_operand.vmem [shape: f32[2,1,16], index: 5, kind: input, shape index: {}]   ;;  %s2361_s6 = inlined_call_operand.vmem [shape: f32[2,16,16], index: 6, kind: input, shape index: {}]   ;;  %s2362_s7 = inlined_call_operand.vmem [shape: f32[2,1,16], index: 7, kind: input, shape index: {}]   ;;  %s2363_s8 = inlined_call_operand.hbm [shape: f32[2,8,16], index: 8, kind: output, shape index: {}]  }
   0x1   :  { %v37_v0 = vld [vmem:[%s2357_s2 + $0x10] sm:$0xff]  ;;  %v38_v1 = vld [vmem:[%s2357_s2 + $0x18] sm:$0xff]  ;;  %v35_v2 = vld [vmem:[%s2357_s2] sm:$0xff] }
   0x2   :  { %v1975_v3 = vpack.c.bf16 %v38_v1, %v37_v0  ;;  %v36_v4 = vld [vmem:[%s2357_s2 + $0x8] sm:$0xff]  ;;  %v30_v5 = vld [vmem:[%s2355_s0] sm:$0xff] }
   0x3   :  { %v32_v6 = vld [vmem:[%s2356_s1] sm:$0xff]  ;;  %v1971_v7 = vpack.c.bf16 %v36_v4, %v35_v2  ;;  %v31_v9 = vld [vmem:[%s2355_s0 + $0x8] sm:$0xff] }
   0x4   :  { %v2156_v8 = vadd.f32 %v32_v6, %v30_v5  ;;  %v39_v10 = vld [vmem:[%s2357_s2 + $0x20] sm:$0xff]  ;;  %v40_v11 = vld [vmem:[%s2357_s2 + $0x28] sm:$0xff]  ;;  %1976 = vmatprep.subr.bf16.mxu1 %v1975_v3  ;;  %v2167_v12 = vadd.f32 %v32_v6, %v31_v9 }
   0x5   :  { %v1979_v13 = vpack.c.bf16 %v40_v11, %v39_v10 }
   0x6   :  { %13 = vsyncpa [#allocation3], 0  ;;  %1978 = vmatpush3.bf16.msra.mxu1 %v1975_v3  ;;  %1972 = vmatprep.subr.bf16.mxu0 %v1971_v7  ;;  %v2088_v14 = vmov 0.0   ;;  %vm2089_vm1 = vmmov 0   ;;  %v1766_v15 = vld [vmem:[%s2358_s3 + $0x1] ss:$0 sm:$0xff] }
   0x7   :  { %1974 = vmatpush3.bf16.msra.mxu0 %v1971_v7  ;;  %1872 = vmatprep.mubr.msk.f32.mxu1 %vm71_vm0, %v2156_v8  ;;  %v1763_v16 = vld [vmem:[%s2358_s3] ss:$0 sm:$0xff]  ;;  %v1769_v25 = vld [vmem:[%s2358_s3 + $0x2] ss:$0 sm:$0xff]  ;;  %vm469_vm2 = vcmask 64512   ;;  %v54_v10 = vld [vmem:[%s2359_s4 + $0x8] sm:$0xff] }
   0x8   :  { %1865 = vmatprep.mubr.msk.f32.mxu0 %vm71_vm0, %v2156_v8  ;;  %1980 = vmatprep.subr.bf16.mxu0 %v1979_v13  ;;  %v53_v9 = vld [vmem:[%s2359_s4] sm:$0xff]  ;;  %s2090_s0 = smov [#allocation2]  }
   0x9   :  { %1873 = vmatmul.mubr.msk.f32.vlgmr.msra.gmra.mrb[0].mxu1 %vm71_vm0, %v2167_v12  ;;  %1882 = vmatprep.subr.mxu1 %v2088_v14  ;;  %v1983_v11 = vpack.c.bf16 %v54_v10, %v53_v9  ;;  %s1752_s1 = sshll.u32 %s2090_s0, 4  ;;  %s1753_s1 = int_to_ptr.vmem [resolvable:$true] %s1752_s1 }
   0xa   :  { %1866 = vmatmul.mubr.msk.f32.vlgmr.msra.gmra.mrb[0].mxu0 %vm71_vm0, %v2167_v12  ;;  %1884 = vmatprep.mubr.msk.f32.mxu1 %vm2089_vm1, %v2088_v14  ;;  %p2069_p1 = scmp.lt.s32.totalorder %s1753_s1, %s1753_s1 }
   0xb   :  { %1982 = vmatpush3.bf16.msra.mxu0 %v1979_v13  ;;  %1879 = vmatprep.mubr.msk.f32.mxu0 %vm71_vm0, %v2156_v8 }
   0xc   :  { %1887 = vmatprep.subr.mxu0 %v2088_v14 }
   0xe   :  { %1880 = vmatmul.mubr.msk.f32.vlgmr.msra.gmra.mrb[2].mxu0 %vm71_vm0, %v2167_v12 }
   0xf   :  { %1889 = vmatprep.mubr.msk.f32.mxu0 %vm2089_vm1, %v2088_v14 }
  0xdc   :  { %v1874_v17 = vpop.f32.mrb[0].mxu1 }
  0xdd   :  { %v231_v18 = vadd.f32 %v1874_v17, %v1766_v15  ;;  %v225_v19 = vpop.f32.mrb[1].mxu1  ;;  %v1867_v20 = vpop.f32.mrb[0].mxu0 }
  0xde   :  { %v226_v21 = vadd.f32 %v1766_v15, %v225_v19  ;;  %v150_v22 = vadd.f32 %v1867_v20, %v1763_v16  ;;  %v144_v23 = vpop.f32.mrb[1].mxu0 }
  0xdf   :  { %v145_v24 = vadd.f32 %v1763_v16, %v144_v23  ;;  %1888 = vmatpush3.xpose.msk.msra.mxu0 %vm71_vm0, %v231_v18 }
  0xe0   :  { %1883 = vmatpush3.xpose.msk.msra.mxu1 %vm71_vm0, %v226_v21  ;;  %1897 = vmatprep.subr.mxu0 %v2088_v14 }
  0xe1   :  { %v1881_v26 = vpop.f32.mrb[2].mxu0  ;;  %1892 = vmatprep.subr.mxu1 %v2088_v14 }
  0xe2   :  { %1890 = vmatmul.mubr.msk.f32.vlgmr.msra.gmra.mrb[4].mxu0 %vm71_vm0, %v150_v22  ;;  %v312_v27 = vadd.f32 %v1881_v26, %v1769_v25  ;;  %v306_v28 = vpop.f32.mrb[3].mxu0 }
  0xe3   :  { %1885 = vmatmul.mubr.msk.f32.vlgmr.msra.gmra.mrb[2].mxu1 %vm71_vm0, %v145_v24  ;;  %v307_v29 = vadd.f32 %v1769_v25, %v306_v28  ;;  %1899 = vmatprep.mubr.msk.f32.mxu0 %vm2089_vm1, %v2088_v14 }
  0xe4   :  { %1898 = vmatpush3.msra.mxu0 %v312_v27  ;;  %1894 = vmatprep.mubr.msk.f32.mxu1 %vm2089_vm1, %v2088_v14 }
  0xe5   :  { %1893 = vmatpush3.msra.mxu1 %v307_v29 }
  0xe6   :  { %1984 = vmatprep.subr.bf16.mxu1 %v1983_v11 }
 0x1b5   :  { %v463_v30 = vpop.f32.mrb[4].mxu0 }
 0x1b6   :  { %v387_v31 = vpop.f32.mrb[2].mxu1  ;;  %v1891_v32 = vpop.f32.mrb[5].mxu0  ;;  %v468_v35 = vmul.f32 0.25, %v463_v30  ;;  %v59_v30 = vld [vmem:[%s2361_s6] sm:$0xff] }
 0x1b7   :  { %v467_v33 = vmul.f32 0.25, %v387_v31  ;;  %v1886_v34 = vpop.f32.mrb[3].mxu1  ;;  %v60_v31 = vld [vmem:[%s2361_s6 + $0x8] sm:$0xff] }
 0x1b8   :  { %v473_v37 = vsel %vm469_vm2, %v468_v35, -inf  ;;  %v1987_v32 = vpack.c.bf16 %v60_v31, %v59_v30  ;;  %v1790_v31 = vld [vmem:[%s2358_s3 + $0x5] ss:$0 sm:$0xff] }
 0x1b9   :  { %v470_v36 = vsel %vm469_vm2, %v467_v33, -inf }
 0x1ba   :  { %471 = vmax.xlane.f32.xlu0 %v470_v36  ;;  %1988 = vmatprep.subr.bf16.mxu0 %v1987_v32 }
 0x1be   :  { %474 = vmax.xlane.f32.xlu0 %v473_v37 }
 0x247   :  { %v472_v38 = vpop.xlane.xlu0 %471 }
 0x248   :  { %v476_v39 = vsub.f32 %v467_v33, %v472_v38  ;;  %v1778_v33 = vld [vmem:[%s2360_s5] ss:$0 sm:$0xff] }
 0x24a   :  { %v478_v40 = vmul.f32 1.442695, %v476_v39 }
 0x24b   :  { %v475_v41 = vpop.xlane.xlu0 %474 }
 0x24c   :  { %2040 = vpow2.f32 %v478_v40  ;;  %v477_v42 = vsub.f32 %v468_v35, %v475_v41  ;;  %v1781_v40 = vld [vmem:[%s2362_s7] ss:$0 sm:$0xff] }
 0x24e   :  { %v480_v43 = vmul.f32 1.442695, %v477_v42 }
 0x250   :  { %2042 = vpow2.f32 %v480_v43 }
 0x256   :  { %v2041_v44 = vpop.eup %2040 }
 0x257   :  { %v482_v45 = vsel %vm469_vm2, %v2041_v44, 0.0 }
 0x258   :  { %483 = vadd.xlane.f32.xlu1 %v482_v45 }
 0x25a   :  { %v2043_v46 = vpop.eup %2042 }
 0x25b   :  { %v485_v47 = vsel %vm469_vm2, %v2043_v46, 0.0 }
 0x25c   :  { %486 = vadd.xlane.f32.xlu1 %v485_v47 }
 0x2e5   :  { %v484_v48 = vpop.xlane.xlu1 %483 }
 0x2e6   :  { %2044 = vrcp.f32 %v484_v48 }
 0x2e9   :  { %v487_v49 = vpop.xlane.xlu1 %486 }
 0x2ea   :  { %2046 = vrcp.f32 %v487_v49 }
 0x2f0   :  { %v2045_v50 = vpop.eup %2044 }
 0x2f1   :  { %v489_v51 = vmul.f32 %v2045_v50, %v2041_v44 }
 0x2f3   :  { %1895 = vmatmul.mubr.msk.f32.vlgmr.msra.gmra.mrb[4].mxu1 %vm469_vm2, %v489_v51 }
 0x2f4   :  { %v2047_v52 = vpop.eup %2046  ;;  %1986 = vmatpush3.bf16.msra.mxu1 %v1983_v11 }
 0x2f5   :  { %v491_v53 = vmul.f32 %v2047_v52, %v2043_v46 }
 0x2f7   :  { %1900 = vmatmul.mubr.msk.f32.vlgmr.msra.gmra.mrb[6].mxu0 %vm469_vm2, %v491_v53 }
 0x2f8   :  { %1990 = vmatpush3.bf16.msra.mxu0 %v1987_v32 }
 0x3c6   :  { %v561_v54 = vpop.f32.mrb[4].mxu1 }
 0x3c7   :  { %v638_v55 = vadd.f32 %v561_v54, %v2156_v8  ;;  %v1896_v56 = vpop.f32.mrb[5].mxu1 }
 0x3c9   :  { %v652_v60 = vmul.f32 %v638_v55, %v638_v55  ;;  %v640_v61 = vsel %vm71_vm0, %v638_v55, 0.0 }
 0x3ca   :  { %v634_v57 = vpop.f32.mrb[6].mxu0 }
 0x3cb   :  { %v639_v58 = vadd.f32 %v634_v57, %v2167_v12  ;;  %v1901_v59 = vpop.f32.mrb[7].mxu0  ;;  %v654_v1 = vsel %vm71_vm0, %v652_v60, 0.0  ;;  %v41_v60 = vld [vmem:[%s2357_s2 + $0x30] sm:$0xff] }
 0x3cd   :  { %v641_v62 = vsel %vm71_vm0, %v639_v58, 0.0  ;;  %v653_v63 = vmul.f32 %v639_v58, %v639_v58 }
 0x3ce   :  { %v642_v0 = vadd.f32 %v641_v62, %v640_v61  ;;  %v42_v61 = vld [vmem:[%s2357_s2 + $0x38] sm:$0xff]  ;;  %v43_v62 = vld [vmem:[%s2357_s2 + $0x40] sm:$0xff] }
 0x3cf   :  { %v655_v2 = vsel %vm71_vm0, %v653_v63, 0.0  ;;  %v1991_v63 = vpack.c.bf16 %v42_v61, %v41_v60 }
 0x3d0   :  { %643 = vadd.xlane.f32.xlu0 %v642_v0  ;;  %v656_v3 = vadd.f32 %v655_v2, %v654_v1  ;;  %v44_v0 = vld [vmem:[%s2357_s2 + $0x48] sm:$0xff] }
 0x3d1   :  { %1992 = vmatprep.subr.bf16.mxu1 %v1991_v63 }
 0x3d2   :  { %657 = vadd.xlane.f32.xlu1 %v656_v3  ;;  %v1995_v3 = vpack.c.bf16 %v44_v0, %v43_v62 }
 0x3d4   :  { %1996 = vmatprep.subr.bf16.mxu0 %v1995_v3 }
 0x45d   :  { %v644_v4 = vpop.xlane.xlu0 %643 }
 0x45e   :  { %v645_v5 = vrot.slane %v644_v4, 4 }
 0x45f   :  { %v658_v6 = vpop.xlane.xlu1 %657 }
 0x460   :  { %v646_v7 = vadd.f32 %v645_v5, %v644_v4  ;;  %v659_v8 = vrot.slane %v658_v6, 4 }
 0x462   :  { %v647_v12 = vrot.slane %v646_v7, 2  ;;  %v660_v13 = vadd.f32 %v659_v8, %v658_v6  ;;  %v45_v6 = vld [vmem:[%s2357_s2 + $0x50] sm:$0xff] }
 0x464   :  { %v661_v15 = vrot.slane %v660_v13, 2  ;;  %v648_v16 = vadd.f32 %v647_v12, %v646_v7  ;;  %v46_v7 = vld [vmem:[%s2357_s2 + $0x58] sm:$0xff] }
 0x465   :  { %v1999_v8 = vpack.c.bf16 %v46_v7, %v45_v6 }
 0x466   :  { %v649_v17 = vrot.slane %v648_v16, 1  ;;  %v662_v18 = vadd.f32 %v661_v15, %v660_v13 }
 0x468   :  { %v650_v19 = vadd.f32 %v649_v17, %v648_v16  ;;  %v663_v20 = vrot.slane %v662_v18, 1 }
 0x46a   :  { %2011 = vpush %v650_v19  ;;  %v664_v21 = vadd.f32 %v663_v20, %v662_v18 }
 0x46c   :  { %2013 = vpush %v664_v21 }
 0x49b   :  { %s2012_s9 = spop %2011 }
 0x49c   :  { %s668_s10 = smul.f32 0.00390625, %s2012_s9 }
 0x49d   :  { %s2014_s11 = spop %2013 }
 0x49e   :  { %s672_s12 = smul.f32 %s668_s10, %s668_s10  ;;  %v674_v24 = vstv %s668_s10 }
 0x49f   :  { %s671_s13 = smul.f32 0.00390625, %s2014_s11  ;;  %v675_v25 = vsub.f32 %v638_v55, %v674_v24  ;;  %v676_v26 = vsub.f32 %v639_v58, %v674_v24 }
 0x4a1   :  { %s673_s14 = ssub.f32 %s671_s13, %s672_s12 }
 0x4a3   :  { %s677_s15 = sadd.f32 1e-05, %s673_s14 }
 0x4a5   :  { %v678_v22 = vstv %s677_s15 }
 0x4a6   :  { %2048 = vrsqrt.f32 %v678_v22 }
 0x4b0   :  { %v2049_v23 = vpop.eup %2048 }
 0x4b1   :  { %2015 = vpush %v2049_v23  ;;  %v1787_v23 = vld [vmem:[%s2358_s3 + $0x4] ss:$0 sm:$0xff] }
 0x4e2   :  { %s2016_s16 = spop %2015 }
 0x4e3   :  { %v681_v27 = vstv %s2016_s16 }
 0x4e4   :  { %v682_v28 = vmul.f32 %v681_v27, %v675_v25  ;;  %v683_v29 = vmul.f32 %v681_v27, %v676_v26  ;;  %v1784_v26 = vld [vmem:[%s2358_s3 + $0x3] ss:$0 sm:$0xff]  ;;  %s2064_s3 = scalar_lea.vmem %s1753_s1, 256 }
 0x4e5   :  { %p2065_p0 = scmp.ne.s32.totalorder %s1753_s1, %s2064_s3  ;;  %p2070_p2 = scmp.lt.s32.totalorder %s2064_s3, %s2064_s3 }
 0x4e6   :  { %1906 = vmatprep.mubr.msk.f32.mxu1 %vm71_vm0, %v682_v28 }
 0x4e7   :  { %1907 = vmatmul.mubr.msk.f32.vlgmr.msra.gmra.mrb[6].mxu1 %vm71_vm0, %v683_v29  ;;  %p2071_p3 = por %p2070_p2, %p2069_p1 }
 0x4e8   :  { %1994 = vmatpush3.bf16.msra.mxu1 %v1991_v63 }
 0x4e9   :  { %2000 = vmatprep.subr.bf16.mxu1 %v1999_v8  ;;  %p2072_p4 = pnand %p2071_p3, %p2065_p0 }
 0x5ba   :  { %v1908_v34 = vpop.f32.mrb[6].mxu1 }
 0x5bb   :  { %v768_v35 = vadd.f32 %v1908_v34, %v1778_v33  ;;  %v762_v36 = vpop.f32.mrb[7].mxu1 }
 0x5bc   :  { %v763_v37 = vadd.f32 %v1778_v33, %v762_v36 }
 0x5bd   :  { %v772_v39 = vmax.f32 %v768_v35, 0.0 }
 0x5be   :  { %v771_v38 = vmax.f32 %v763_v37, 0.0 }
 0x5c0   :  { %1913 = vmatprep.mubr.msk.f32.mxu0 %vm71_vm0, %v771_v38 }
 0x5c1   :  { %1914 = vmatmul.mubr.msk.f32.vlgmr.msra.gmra.mrb[8].mxu0 %vm71_vm0, %v772_v39 }
 0x5c2   :  { %1998 = vmatpush3.bf16.msra.mxu0 %v1995_v3 }
 0x5c3   :  { %1937 = vmatprep.subr.mxu0 %v2088_v14 }
 0x694   :  { %v1915_v41 = vpop.f32.mrb[8].mxu0 }
 0x695   :  { %v857_v42 = vadd.f32 %v1915_v41, %v1781_v40  ;;  %v851_v43 = vpop.f32.mrb[9].mxu0 }
 0x696   :  { %v852_v44 = vadd.f32 %v1781_v40, %v851_v43 }
 0x697   :  { %v861_v45 = vadd.f32 %v857_v42, %v683_v29 }
 0x698   :  { %v860_v46 = vadd.f32 %v852_v44, %v682_v28 }
 0x699   :  { %v863_v47 = vsel %vm71_vm0, %v861_v45, 0.0  ;;  %v875_v48 = vmul.f32 %v861_v45, %v861_v45 }
 0x69a   :  { %v862_v49 = vsel %vm71_vm0, %v860_v46, 0.0  ;;  %v874_v50 = vmul.f32 %v860_v46, %v860_v46 }
 0x69b   :  { %v864_v51 = vadd.f32 %v863_v47, %v862_v49  ;;  %v877_v52 = vsel %vm71_vm0, %v875_v48, 0.0 }
 0x69c   :  { %v876_v53 = vsel %vm71_vm0, %v874_v50, 0.0 }
 0x69d   :  { %865 = vadd.xlane.f32.xlu0 %v864_v51  ;;  %v878_v54 = vadd.f32 %v877_v52, %v876_v53 }
 0x69f   :  { %879 = vadd.xlane.f32.xlu1 %v878_v54 }
 0x72a   :  { %v866_v55 = vpop.xlane.xlu0 %865 }
 0x72b   :  { %v867_v56 = vrot.slane %v866_v55, 4 }
 0x72c   :  { %v880_v57 = vpop.xlane.xlu1 %879 }
 0x72d   :  { %v868_v58 = vadd.f32 %v867_v56, %v866_v55  ;;  %v881_v59 = vrot.slane %v880_v57, 4 }
 0x72f   :  { %v869_v1 = vrot.slane %v868_v58, 2  ;;  %v882_v2 = vadd.f32 %v881_v59, %v880_v57 }
 0x731   :  { %v883_v4 = vrot.slane %v882_v2, 2  ;;  %v870_v5 = vadd.f32 %v869_v1, %v868_v58 }
 0x733   :  { %v871_v9 = vrot.slane %v870_v5, 1  ;;  %v884_v10 = vadd.f32 %v883_v4, %v882_v2 }
 0x735   :  { %v872_v11 = vadd.f32 %v871_v9, %v870_v5  ;;  %v885_v12 = vrot.slane %v884_v10, 1 }
 0x737   :  { %2017 = vpush %v872_v11  ;;  %v886_v13 = vadd.f32 %v885_v12, %v884_v10 }
 0x739   :  { %2019 = vpush %v886_v13 }
 0x768   :  { %s2018_s13 = spop %2017 }
 0x769   :  { %s890_s14 = smul.f32 0.00390625, %s2018_s13 }
 0x76a   :  { %s2020_s15 = spop %2019 }
 0x76b   :  { %s894_s16 = smul.f32 %s890_s14, %s890_s14  ;;  %v896_v17 = vstv %s890_s14 }
 0x76c   :  { %s893_s17 = smul.f32 0.00390625, %s2020_s15  ;;  %v897_v18 = vsub.f32 %v860_v46, %v896_v17  ;;  %v898_v19 = vsub.f32 %v861_v45, %v896_v17  ;;  %v55_v17 = vld [vmem:[%s2359_s4 + $0x10] sm:$0xff] }
 0x76e   :  { %s895_s18 = ssub.f32 %s893_s17, %s894_s16 }
 0x770   :  { %s899_s19 = sadd.f32 1e-05, %s895_s18 }
 0x772   :  { %v900_v15 = vstv %s899_s19 }
 0x773   :  { %2050 = vrsqrt.f32 %v900_v15 }
 0x77d   :  { %v2051_v16 = vpop.eup %2050 }
 0x77e   :  { %2021 = vpush %v2051_v16 }
 0x7af   :  { %s2022_s2 = spop %2021 }
 0x7b0   :  { %v903_v20 = vstv %s2022_s2 }
 0x7b1   :  { %v2263_v21 = vmul.f32 %v903_v20, %v897_v18  ;;  %v2265_v22 = vmul.f32 %v903_v20, %v898_v19  ;;  %v56_v18 = vld [vmem:[%s2359_s4 + $0x18] sm:$0xff] }
 0x7b2   :  { %v2003_v19 = vpack.c.bf16 %v56_v18, %v55_v17 }
 0x7b3   :  { %1920 = vmatprep.mubr.msk.f32.mxu1 %vm71_vm0, %v2263_v21  ;;  %1927 = vmatprep.mubr.msk.f32.mxu0 %vm71_vm0, %v2263_v21 }
 0x7b4   :  { %1921 = vmatmul.mubr.msk.f32.vlgmr.msra.gmra.mrb[8].mxu1 %vm71_vm0, %v2265_v22  ;;  %1928 = vmatmul.mubr.msk.f32.vlgmr.msra.gmra.mrb[10].mxu0 %vm71_vm0, %v2265_v22 }
 0x7b5   :  { %2002 = vmatpush3.bf16.msra.mxu1 %v1999_v8  ;;  %1934 = vmatprep.mubr.msk.f32.mxu1 %vm71_vm0, %v2263_v21 }
 0x7b6   :  { %1942 = vmatprep.subr.mxu1 %v2088_v14  ;;  %1939 = vmatprep.mubr.msk.f32.mxu0 %vm2089_vm1, %v2088_v14 }
 0x7b8   :  { %1935 = vmatmul.mubr.msk.f32.vlgmr.msra.gmra.mrb[10].mxu1 %vm71_vm0, %v2265_v22 }
 0x7b9   :  { %1944 = vmatprep.mubr.msk.f32.mxu1 %vm2089_vm1, %v2088_v14 }
 0x887   :  { %v1922_v24 = vpop.f32.mrb[8].mxu1  ;;  %v1929_v25 = vpop.f32.mrb[10].mxu0 }
 0x888   :  { %v1071_v27 = vadd.f32 %v1929_v25, %v1787_v23  ;;  %v984_v28 = vpop.f32.mrb[9].mxu1  ;;  %v1065_v29 = vpop.f32.mrb[11].mxu0  ;;  %v990_v32 = vadd.f32 %v1922_v24, %v1784_v26 }
 0x889   :  { %v1066_v30 = vadd.f32 %v1787_v23, %v1065_v29  ;;  %v985_v34 = vadd.f32 %v1784_v26, %v984_v28 }
 0x88a   :  { %1943 = vmatpush3.xpose.msk.msra.mxu1 %vm71_vm0, %v1071_v27 }
 0x88b   :  { %v1936_v33 = vpop.f32.mrb[10].mxu1  ;;  %1938 = vmatpush3.xpose.msk.msra.mxu0 %vm71_vm0, %v1066_v30  ;;  %1952 = vmatprep.subr.mxu1 %v2088_v14 }
 0x88c   :  { %v1152_v35 = vadd.f32 %v1936_v33, %v1790_v31  ;;  %v1146_v36 = vpop.f32.mrb[11].mxu1  ;;  %1947 = vmatprep.subr.mxu0 %v2088_v14 }
 0x88d   :  { %v1147_v37 = vadd.f32 %v1790_v31, %v1146_v36  ;;  %1945 = vmatmul.mubr.msk.f32.vlgmr.msra.gmra.mrb[12].mxu1 %vm71_vm0, %v990_v32 }
 0x88e   :  { %1940 = vmatmul.mubr.msk.f32.vlgmr.msra.gmra.mrb[12].mxu0 %vm71_vm0, %v985_v34  ;;  %1953 = vmatpush3.msra.mxu1 %v1152_v35 }
 0x88f   :  { %1948 = vmatpush3.msra.mxu0 %v1147_v37  ;;  %1954 = vmatprep.mubr.msk.f32.mxu1 %vm2089_vm1, %v2088_v14  ;;  %v61_v37 = vld [vmem:[%s2361_s6 + $0x10] sm:$0xff] }
 0x890   :  { %1949 = vmatprep.mubr.msk.f32.mxu0 %vm2089_vm1, %v2088_v14  ;;  %2004 = vmatprep.subr.bf16.mxu0 %v2003_v19 }
 0x960   :  { %v1303_v38 = vpop.f32.mrb[12].mxu1 }
 0x961   :  { %v1308_v39 = vmul.f32 0.25, %v1303_v38  ;;  %v1227_v40 = vpop.f32.mrb[12].mxu0  ;;  %v1946_v41 = vpop.f32.mrb[13].mxu1  ;;  %v62_v38 = vld [vmem:[%s2361_s6 + $0x18] sm:$0xff] }
 0x962   :  { %v1307_v42 = vmul.f32 0.25, %v1227_v40  ;;  %v1941_v43 = vpop.f32.mrb[13].mxu0  ;;  %v1799_v40 = vld [vmem:[%s2360_s5 + $0x1] ss:$0 sm:$0xff] }
 0x963   :  { %v1312_v44 = vsel %vm469_vm2, %v1308_v39, -inf }
 0x964   :  { %1313 = vmax.xlane.f32.xlu1 %v1312_v44  ;;  %v1309_v45 = vsel %vm469_vm2, %v1307_v42, -inf }
 0x965   :  { %1310 = vmax.xlane.f32.xlu0 %v1309_v45 }
 0x9f1   :  { %v1314_v46 = vpop.xlane.xlu1 %1313 }
 0x9f2   :  { %v1316_v47 = vsub.f32 %v1308_v39, %v1314_v46  ;;  %v1311_v48 = vpop.xlane.xlu0 %1310  ;;  %v2007_v39 = vpack.c.bf16 %v62_v38, %v61_v37 }
 0x9f3   :  { %v1315_v49 = vsub.f32 %v1307_v42, %v1311_v48 }
 0x9f4   :  { %v1319_v50 = vmul.f32 1.442695, %v1316_v47  ;;  %2008 = vmatprep.subr.bf16.mxu1 %v2007_v39  ;;  %v1802_v47 = vld [vmem:[%s2362_s7 + $0x1] ss:$0 sm:$0xff] }
 0x9f5   :  { %v1317_v51 = vmul.f32 1.442695, %v1315_v49 }
 0x9f6   :  { %2052 = vpow2.f32 %v1319_v50 }
 0x9f7   :  { %2054 = vpow2.f32 %v1317_v51 }
 0xa00   :  { %v2053_v14 = vpop.eup %2052 }
 0xa01   :  { %v2055_v52 = vpop.eup %2054  ;;  %v1324_v53 = vsel %vm469_vm2, %v2053_v14, 0.0 }
 0xa02   :  { %1325 = vadd.xlane.f32.xlu1 %v1324_v53  ;;  %v1321_v54 = vsel %vm469_vm2, %v2055_v52, 0.0 }
 0xa03   :  { %1322 = vadd.xlane.f32.xlu0 %v1321_v54 }
 0xa8f   :  { %v1326_v55 = vpop.xlane.xlu1 %1325 }
 0xa90   :  { %2056 = vrcp.f32 %v1326_v55  ;;  %v1323_v56 = vpop.xlane.xlu0 %1322 }
 0xa91   :  { %2058 = vrcp.f32 %v1323_v56 }
 0xa9a   :  { %v2057_v57 = vpop.eup %2056 }
 0xa9b   :  { %v2059_v58 = vpop.eup %2058  ;;  %v1330_v59 = vmul.f32 %v2057_v57, %v2053_v14 }
 0xa9c   :  { %v1328_v60 = vmul.f32 %v2059_v58, %v2055_v52 }
 0xa9d   :  { %1955 = vmatmul.mubr.msk.f32.vlgmr.msra.gmra.mrb[14].mxu1 %vm469_vm2, %v1330_v59 }
 0xa9e   :  { %1950 = vmatmul.mubr.msk.f32.vlgmr.msra.gmra.mrb[14].mxu0 %vm469_vm2, %v1328_v60  ;;  %2010 = vmatpush3.bf16.msra.mxu1 %v2007_v39 }
 0xa9f   :  { %2006 = vmatpush3.bf16.msra.mxu0 %v2003_v19 }
 0xb70   :  { %v1473_v61 = vpop.f32.mrb[14].mxu1 }
 0xb71   :  { %v1478_v62 = vadd.f32 %v1473_v61, %v2265_v22  ;;  %v1400_v63 = vpop.f32.mrb[14].mxu0  ;;  %v1956_v0 = vpop.f32.mrb[15].mxu1 }
 0xb72   :  { %v1477_v1 = vadd.f32 %v1400_v63, %v2263_v21  ;;  %v1951_v2 = vpop.f32.mrb[15].mxu0 }
 0xb73   :  { %v1480_v3 = vsel %vm71_vm0, %v1478_v62, 0.0  ;;  %v1492_v4 = vmul.f32 %v1478_v62, %v1478_v62 }
 0xb74   :  { %v1479_v5 = vsel %vm71_vm0, %v1477_v1, 0.0  ;;  %v1491_v6 = vmul.f32 %v1477_v1, %v1477_v1 }
 0xb75   :  { %v1481_v7 = vadd.f32 %v1480_v3, %v1479_v5  ;;  %v1494_v8 = vsel %vm71_vm0, %v1492_v4, 0.0 }
 0xb76   :  { %v1493_v9 = vsel %vm71_vm0, %v1491_v6, 0.0 }
 0xb77   :  { %1482 = vadd.xlane.f32.xlu0 %v1481_v7  ;;  %v1495_v10 = vadd.f32 %v1494_v8, %v1493_v9 }
 0xb79   :  { %1496 = vadd.xlane.f32.xlu1 %v1495_v10 }
 0xc04   :  { %v1483_v11 = vpop.xlane.xlu0 %1482 }
 0xc05   :  { %v1484_v12 = vrot.slane %v1483_v11, 4 }
 0xc06   :  { %v1497_v13 = vpop.xlane.xlu1 %1496 }
 0xc07   :  { %v1485_v15 = vadd.f32 %v1484_v12, %v1483_v11  ;;  %v1498_v16 = vrot.slane %v1497_v13, 4 }
 0xc09   :  { %v1486_v20 = vrot.slane %v1485_v15, 2  ;;  %v1499_v21 = vadd.f32 %v1498_v16, %v1497_v13 }
 0xc0b   :  { %v1500_v22 = vrot.slane %v1499_v21, 2  ;;  %v1487_v23 = vadd.f32 %v1486_v20, %v1485_v15 }
 0xc0d   :  { %v1488_v24 = vrot.slane %v1487_v23, 1  ;;  %v1501_v25 = vadd.f32 %v1500_v22, %v1499_v21 }
 0xc0f   :  { %v1489_v26 = vadd.f32 %v1488_v24, %v1487_v23  ;;  %v1502_v27 = vrot.slane %v1501_v25, 1 }
 0xc11   :  { %2023 = vpush %v1489_v26  ;;  %v1503_v28 = vadd.f32 %v1502_v27, %v1501_v25 }
 0xc13   :  { %2025 = vpush %v1503_v28 }
 0xc42   :  { %s2024_s27 = spop %2023 }
 0xc43   :  { %s1507_s28 = smul.f32 0.00390625, %s2024_s27 }
 0xc44   :  { %s2026_s29 = spop %2025 }
 0xc45   :  { %s1511_s30 = smul.f32 %s1507_s28, %s1507_s28  ;;  %v1513_v31 = vstv %s1507_s28 }
 0xc46   :  { %s1510_s9 = smul.f32 0.00390625, %s2026_s29  ;;  %v1514_v32 = vsub.f32 %v1477_v1, %v1513_v31  ;;  %v1515_v33 = vsub.f32 %v1478_v62, %v1513_v31 }
 0xc48   :  { %s1512_s4 = ssub.f32 %s1510_s9, %s1511_s30 }
 0xc4a   :  { %s1516_s10 = sadd.f32 1e-05, %s1512_s4 }
 0xc4c   :  { %v1517_v29 = vstv %s1516_s10 }
 0xc4d   :  { %2060 = vrsqrt.f32 %v1517_v29 }
 0xc57   :  { %v2061_v30 = vpop.eup %2060 }
 0xc58   :  { %2027 = vpush %v2061_v30 }
 0xc89   :  { %s2028_s11 = spop %2027 }
 0xc8a   :  { %v1520_v34 = vstv %s2028_s11 }
 0xc8b   :  { %v1521_v35 = vmul.f32 %v1520_v34, %v1514_v32  ;;  %v1522_v36 = vmul.f32 %v1520_v34, %v1515_v33 }
 0xc8d   :  { %1961 = vmatprep.mubr.msk.f32.mxu0 %vm71_vm0, %v1521_v35 }
 0xc8e   :  { %1962 = vmatmul.mubr.msk.f32.vlgmr.msra.gmra.mrb[16].mxu0 %vm71_vm0, %v1522_v36 }
 0xd61   :  { %v1963_v41 = vpop.f32.mrb[16].mxu0 }
 0xd62   :  { %v1607_v42 = vadd.f32 %v1963_v41, %v1799_v40  ;;  %v1601_v43 = vpop.f32.mrb[17].mxu0 }
 0xd63   :  { %v1602_v44 = vadd.f32 %v1799_v40, %v1601_v43 }
 0xd64   :  { %v1611_v46 = vmax.f32 %v1607_v42, 0.0 }
 0xd65   :  { %v1610_v45 = vmax.f32 %v1602_v44, 0.0 }
 0xd67   :  { %1968 = vmatprep.mubr.msk.f32.mxu1 %vm71_vm0, %v1610_v45 }
 0xd68   :  { %1969 = vmatmul.mubr.msk.f32.vlgmr.msra.gmra.mrb[16].mxu1 %vm71_vm0, %v1611_v46 }
 0xe3b   :  { %v1970_v48 = vpop.f32.mrb[16].mxu1 }
 0xe3c   :  { %v1696_v49 = vadd.f32 %v1970_v48, %v1802_v47  ;;  %v1690_v50 = vpop.f32.mrb[17].mxu1 }
 0xe3d   :  { %v1691_v51 = vadd.f32 %v1802_v47, %v1690_v50 }
 0xe3e   :  { %v1700_v14 = vadd.f32 %v1696_v49, %v1522_v36 }
 0xe3f   :  { %v1699_v52 = vadd.f32 %v1691_v51, %v1521_v35 }
 0xe40   :  { %v1702_v53 = vsel %vm71_vm0, %v1700_v14, 0.0  ;;  %v1714_v54 = vmul.f32 %v1700_v14, %v1700_v14 }
 0xe41   :  { %v1701_v55 = vsel %vm71_vm0, %v1699_v52, 0.0  ;;  %v1713_v56 = vmul.f32 %v1699_v52, %v1699_v52 }
 0xe42   :  { %v1703_v57 = vadd.f32 %v1702_v53, %v1701_v55  ;;  %v1716_v58 = vsel %vm71_vm0, %v1714_v54, 0.0 }
 0xe43   :  { %v1715_v59 = vsel %vm71_vm0, %v1713_v56, 0.0 }
 0xe44   :  { %1704 = vadd.xlane.f32.xlu0 %v1703_v57  ;;  %v1717_v60 = vadd.f32 %v1716_v58, %v1715_v59 }
 0xe46   :  { %1718 = vadd.xlane.f32.xlu1 %v1717_v60 }
 0xed1   :  { %v1705_v61 = vpop.xlane.xlu0 %1704 }
 0xed2   :  { %v1706_v62 = vrot.slane %v1705_v61, 4 }
 0xed3   :  { %v1719_v63 = vpop.xlane.xlu1 %1718 }
 0xed4   :  { %v1707_v0 = vadd.f32 %v1706_v62, %v1705_v61  ;;  %v1720_v1 = vrot.slane %v1719_v63, 4 }
 0xed6   :  { %v1708_v2 = vrot.slane %v1707_v0, 2  ;;  %v1721_v3 = vadd.f32 %v1720_v1, %v1719_v63 }
 0xed8   :  { %v1709_v4 = vadd.f32 %v1708_v2, %v1707_v0  ;;  %v1722_v5 = vrot.slane %v1721_v3, 2 }
 0xeda   :  { %v1723_v6 = vadd.f32 %v1722_v5, %v1721_v3  ;;  %v1710_v7 = vrot.slane %v1709_v4, 1 }
 0xedc   :  { %v1711_v8 = vadd.f32 %v1710_v7, %v1709_v4  ;;  %v1724_v9 = vrot.slane %v1723_v6, 1 }
 0xede   :  { %2029 = vpush %v1711_v8  ;;  %v1725_v10 = vadd.f32 %v1724_v9, %v1723_v6 }
 0xee0   :  { %2031 = vpush %v1725_v10 }
 0xf0f   :  { %s2030_s5 = spop %2029 }
 0xf10   :  { %s1729_s6 = smul.f32 0.00390625, %s2030_s5 }
 0xf11   :  { %s2032_s7 = spop %2031 }
 0xf12   :  { %s1733_s2 = smul.f32 %s1729_s6, %s1729_s6  ;;  %v1735_v13 = vstv %s1729_s6 }
 0xf13   :  { %s1732_s20 = smul.f32 0.00390625, %s2032_s7  ;;  %v1736_v15 = vsub.f32 %v1699_v52, %v1735_v13  ;;  %v1737_v16 = vsub.f32 %v1700_v14, %v1735_v13 }
 0xf15   :  { %s1734_s21 = ssub.f32 %s1732_s20, %s1733_s2 }
 0xf17   :  { %s1738_s22 = sadd.f32 1e-05, %s1734_s21 }
 0xf19   :  { %v1739_v11 = vstv %s1738_s22 }
 0xf1a   :  { %2062 = vrsqrt.f32 %v1739_v11 }
 0xf24   :  { %v2063_v12 = vpop.eup %2062 }
 0xf25   :  { %2033 = vpush %v2063_v12 }
 0xf56   :  { %s2034_s23 = spop %2033 }
 0xf57   :  { %v1742_v17 = vstv %s2034_s23 }
 0xf58   :  { %v1743_v18 = vmul.f32 %v1742_v17, %v1736_v15  ;;  %v1744_v19 = vmul.f32 %v1742_v17, %v1737_v16 }
 0xf5a   :  { %1745 = vst.msk [vmem:[#allocation2] sm:$0xff] %vm71_vm0, %v1743_v18  ;;  %1746 = vst.msk [vmem:[#allocation2 + $0x8] sm:$0xff] %vm71_vm0, %v1744_v19 }
 0xf5b   :  { %2075 = shalt.err (!%p2072_p4)
}
 0xf5c   :  { %s2076_s26 = scalar_lea.hbm %s2363_s8, 256 }
 0xf5d   :  { %p2077_p5 = scmp.ne.s32.totalorder %s2363_s8, %s2076_s26  ;;  %p2080_p6 = scmp.lt.u32.totalorder %s2076_s26, %s2363_s8 }
 0xf5f   :  { %p2082_p7 = pnand %p2080_p6, %p2077_p5 }
 0xf61   :  { %2085 = shalt.err (!%p2082_p7)
}
 0xf62   :  { %s2091_s9 = smov 128   ;;  %s2092_s4 = smov 8  }
 0xf63   :  { %1758 = dma.vmem_to_hbm [thread:$0]  %s1753_s1, 256, %s2363_s8, [#allocation3], %s2091_s9, %s2091_s9, %s2092_s4  }
 0xf64   :  { %2086 = dma.done.wait [#allocation3], 256  }
 0xf65   :  { %2087 = vsyncadd [#allocation3], 4294967040 }
 0xf66   :  { %1762 = vsyncpa [#allocation3], 1 }

</bundles_post_ra>
